<compile_context>
chip_gen: v6e
topology: v6e:2x2x1
jax: 0.10.0
libtpu: 0.0.40
codegen_flags: <defaults>
</compile_context>

<pallas_src>
import functools
from dataclasses import dataclass

import jax
import jax.numpy as jnp
from jax.experimental import pallas as pl
from jax.experimental.pallas import tpu as pltpu


# ----------------------------- model configuration --------------------------
@dataclass
class ModelArgs:
    dim: int = 1024
    n_heads: int = 8
    n_kv_heads: int = 8
    norm_eps: float = 1e-8
    rope_theta: float = 10000.0
    max_position_embeddings: int = 8192
    q_compressed_dim: int = 128
    q_nope_head_dim: int = 96
    q_rope_head_dim: int = 32
    kv_compressed_dim: int = 128
    k_nope_head_dim: int = 64
    k_rope_head_dim: int = 64
    v_head_dim: int = 256

    def __post_init__(self):
        assert self.dim % self.n_heads == 0
        assert self.n_heads % self.n_kv_heads == 0
        assert (self.q_nope_head_dim + self.q_rope_head_dim
                == self.k_nope_head_dim + self.k_rope_head_dim)

    @property
    def gqa_factor(self) -> int:
        return self.n_heads // self.n_kv_heads


# ------------------------------ tiling helpers -------------------------------
def _pick_col_tile(total_cols: int, bytes_per_col: int,
                   target_block_bytes: int = 2 << 20) -> int:
    """Largest lane-dense column tile (multiple of 256, divides total) in budget."""
    max_cols = max(256, target_block_bytes // max(bytes_per_col, 1))
    if total_cols <= max_cols:
        return total_cols
    start = int(max_cols) - int(max_cols) % 256
    for cand in range(start, 255, -256):
        if total_cols % cand == 0:
            return cand
    return total_cols


def _pick_row_tile(rows: int, max_rows: int = 1024) -> int:
    if rows <= max_rows:
        return rows
    for cand in range(max_rows, 7, -8):
        if rows % cand == 0:
            return cand
    return rows


# --------------------- rotation-direction probe (one-time) -------------------
_ROLL_EVEN_SEL = None


def _roll_even_sel() -> int:
    """Which in-kernel rotation supplies x[j+1] on even lanes.

    Probed once at runtime so the RoPE kernel never silently depends on
    pltpu.roll's sign convention (0 == jnp.roll convention).
    """
    global _ROLL_EVEN_SEL
    if _ROLL_EVEN_SEL is None:
        def probe(x_ref, o_ref):
            o_ref[...] = pltpu.roll(x_ref[...], 1, axis=1)

        x = jnp.arange(256, dtype=jnp.int32).reshape(2, 128)
        rolled = pl.pallas_call(
            probe, out_shape=jax.ShapeDtypeStruct((2, 128), jnp.int32))(x)
        # jnp.roll convention: roll(x, 1)[..., 1] == x[..., 0].
        _ROLL_EVEN_SEL = 0 if int(rolled[0, 1]) == int(x[0, 0]) else 1
    return _ROLL_EVEN_SEL


# --------------------------------- RoPE --------------------------------------
def make_rope_cache(head_dim: int, max_position_embeddings: int, rope_theta: float):
    """Pair-duplicated f32 caches so the kernel works on the interleaved layout.

    cos_dup[:, 2i] = cos_dup[:, 2i+1] = cos_i
    sin_sgn[:, 2i] = -sin_i,  sin_sgn[:, 2i+1] = +sin_i
    """
    if head_dim % 2:
        raise ValueError("head_dim must be even")
    inv_freq = 1.0 / (rope_theta ** (
        jnp.arange(0, head_dim, 2, dtype=jnp.float32) / head_dim))
    pos = jnp.arange(max_position_embeddings, dtype=jnp.float32)
    ang = jnp.outer(pos, inv_freq)                              # (P, D/2)
    cos_dup = jnp.repeat(jnp.cos(ang), 2, axis=-1)              # (P, D)
    sign = jnp.tile(jnp.array([-1.0, 1.0], jnp.float32), head_dim // 2)
    sin_sgn = jnp.repeat(jnp.sin(ang), 2, axis=-1) * sign       # (P, D)
    return cos_dup, sin_sgn


def _rope_kernel(x_ref, cos_ref, sin_ref, o_ref, *, even_sel):
    # x_ref: (1, H, TC) lane-dense block of the flattened (B, H, S*D) view.
    # cos_ref / sin_ref: (1, 1, TC) f32, shared across every head in the block.
    x = x_ref[...].astype(jnp.float32)
    tc = x.shape[-1]
    # In-kernel pair-partner swap: even lanes take x[j+1], odd lanes x[j-1].
    # Two XLU rotations + one VPU select -- both have slack under the
    # HBM-bound roofline.  TC is even, so lane parity inside a column tile
    # equals global parity and the cyclic wrap-around lanes are never selected.
    roll_a = pltpu.roll(x, tc - 1, axis=2)   # x[j+1] under jnp.roll convention
    roll_b = pltpu.roll(x, 1, axis=2)        # x[j-1] under jnp.roll convention
    lane = jax.lax.broadcasted_iota(jnp.int32, x.shape, dimension=2)
    swapped = jnp.where((lane % 2) == even_sel, roll_a, roll_b)
    out = x * cos_ref[...] + swapped * sin_ref[...]
    o_ref[...] = out.astype(o_ref.dtype)


def rope_apply(x, position_ids, cos_dup, sin_sgn, *, min_pallas_bytes=0):
    """Interleaved RoPE (same math as the PyTorch RotaryPositionalEmbedding).

    x: (B, H, S, D); position_ids: (B, S).  cos/sin stay f32, the result is
    cast back to x.dtype only at the store.
    """
    B, H, S, D = x.shape
    # Tiny decode-step calls: kernel launch + pipeline ramp dominates, let XLA
    # fuse those instead (set min_pallas_bytes ~1 MiB in production).
    if x.size * x.dtype.itemsize < min_pallas_bytes:
        return _rope_ref(x, position_ids, cos_dup, sin_sgn)

    cols = S * D
    xf = x.reshape(B, H, cols)                                   # free reshape
    cos = cos_dup[position_ids].reshape(B, 1, cols)              # (B, 1, S*D) f32
    sin = sin_sgn[position_ids].reshape(B, 1, cols)
    tc = _pick_col_tile(cols, bytes_per_col=H * x.dtype.itemsize)
    grid = (B, cols // tc)

    out = pl.pallas_call(
        functools.partial(_rope_kernel, even_sel=_roll_even_sel()),
        out_shape=jax.ShapeDtypeStruct((B, H, cols), x.dtype),
        grid_spec=pltpu.PrefetchScalarGridSpec(
            num_scalar_prefetch=0,
            grid=grid,
            in_specs=[
                pl.BlockSpec((1, H, tc), lambda b, c: (b, 0, c)),   # x
                pl.BlockSpec((1, 1, tc), lambda b, c: (b, 0, c)),   # cos (per batch)
                pl.BlockSpec((1, 1, tc), lambda b, c: (b, 0, c)),   # sin (per batch)
            ],
            out_specs=pl.BlockSpec((1, H, tc), lambda b, c: (b, 0, c)),
        ),
        compiler_params=pltpu.CompilerParams(
            dimension_semantics=("parallel", "parallel")),
    )(xf, cos, sin)
    return out.reshape(B, H, S, D)


def _rope_ref(x, position_ids, cos_dup, sin_sgn):
    """Pure-JAX reference (identical interleaved math)."""
    B, H, S, D = x.shape
    cos = cos_dup[position_ids][:, None, :, :]
    sin = sin_sgn[position_ids][:, None, :, :]
    xf = x.astype(jnp.float32)
    swapped = xf.reshape(B, H, S, D // 2, 2)[..., ::-1].reshape(B, H, S, D)
    return (xf * cos + swapped * sin).astype(x.dtype)


# -------------------------------- RMSNorm ------------------------------------
def _rmsnorm_kernel(x_ref, w_ref, o_ref, *, eps):
    x = x_ref[...].astype(jnp.float32)                 # (TR, dim)
    w = w_ref[...].astype(jnp.float32)                 # (1, dim)
    ms = jnp.mean(x * x, axis=-1, keepdims=True)
    o_ref[...] = (w * x * jax.lax.rsqrt(ms + eps)).astype(o_ref.dtype)


def rmsnorm(x, weight, eps):
    shape = x.shape
    dim = shape[-1]
    rows = x.size // dim
    x2 = x.reshape(rows, dim)
    w2 = weight.reshape(1, dim)
    tr = _pick_row_tile(rows)
    out = pl.pallas_call(
        functools.partial(_rmsnorm_kernel, eps=eps),
        out_shape=jax.ShapeDtypeStruct((rows, dim), x.dtype),
        grid_spec=pltpu.PrefetchScalarGridSpec(
            num_scalar_prefetch=0,
            grid=(rows // tr,),
            in_specs=[
                pl.BlockSpec((tr, dim), lambda r: (r, 0)),
                pl.BlockSpec((1, dim), lambda r: (0, 0)),
            ],
            out_specs=pl.BlockSpec((tr, dim), lambda r: (r, 0)),
        ),
        compiler_params=pltpu.CompilerParams(dimension_semantics=("parallel",)),
    )(x2, w2)
    return out.reshape(shape)


def _rmsnorm_ref(x, weight, eps):
    xf = x.astype(jnp.float32)
    ms = jnp.mean(xf * xf, axis=-1, keepdims=True)
    return (weight * xf * jax.lax.rsqrt(ms + eps)).astype(x.dtype)


# ------------------------------- attention -----------------------------------
def _attn_kernel(q_ref, k_ref, v_ref, o_ref, *, scale):
    q = q_ref[...].astype(jnp.float32) * scale          # (Sq, Dk)
    k = k_ref[...].astype(jnp.float32)                  # (Sk, Dk)
    v = v_ref[...].astype(jnp.float32)                  # (Sk, Dv)
    s = jax.lax.dot_general(q, k, (((1,), (1,)), ((), ())),
                            preferred_element_type=jnp.float32)   # (Sq, Sk)
    s = s - jnp.max(s, axis=-1, keepdims=True)
    p = jnp.exp(s)
    p = p / jnp.sum(p, axis=-1, keepdims=True)
    o_ref[...] = jnp.dot(p, v, preferred_element_type=jnp.float32).astype(o_ref.dtype)


def _attn_kernel_masked(q_ref, k_ref, v_ref, m_ref, o_ref, *, scale):
    q = q_ref[...].astype(jnp.float32) * scale
    k = k_ref[...].astype(jnp.float32)
    v = v_ref[...].astype(jnp.float32)
    s = jax.lax.dot_general(q, k, (((1,), (1,)), ((), ())),
                            preferred_element_type=jnp.float32)
    s = s + m_ref[...].astype(jnp.float32)
    s = s - jnp.max(s, axis=-1, keepdims=True)
    p = jnp.exp(s)
    p = p / jnp.sum(p, axis=-1, keepdims=True)
    o_ref[...] = jnp.dot(p, v, preferred_element_type=jnp.float32).astype(o_ref.dtype)


def sdpa(query, key, value, mask=None):
    # TODO(synk): flash-style online-softmax tiling over the key axis for long
    # sequences; this variant keeps the full (Sq, Sk) score tile per (b, h) in VMEM.
    B, H, Sq, Dk = query.shape
    Sk = key.shape[2]
    Dv = value.shape[3]
    scale = float(Dk) ** -0.5

    q_spec = pl.BlockSpec((None, None, Sq, Dk), lambda b, h: (b, h, 0, 0))
    k_spec = pl.BlockSpec((None, None, Sk, Dk), lambda b, h: (b, h, 0, 0))
    v_spec = pl.BlockSpec((None, None, Sk, Dv), lambda b, h: (b, h, 0, 0))
    o_spec = pl.BlockSpec((None, None, Sq, Dv), lambda b, h: (b, h, 0, 0))
    if mask is None:
        kernel = functools.partial(_attn_kernel, scale=scale)
        in_specs = [q_spec, k_spec, v_spec]
        operands = (query, key, value)
    else:
        if mask.dtype == jnp.bool_:
            mask = jnp.where(mask, 0.0, -jnp.inf)
        mask = jnp.broadcast_to(mask, (B, H, Sq, Sk)).astype(jnp.float32)
        m_spec = pl.BlockSpec((None, None, Sq, Sk), lambda b, h: (b, h, 0, 0))
        kernel = functools.partial(_attn_kernel_masked, scale=scale)
        in_specs = [q_spec, k_spec, v_spec, m_spec]
        operands = (query, key, value, mask)

    return pl.pallas_call(
        kernel,
        out_shape=jax.ShapeDtypeStruct((B, H, Sq, Dv), query.dtype),
        grid_spec=pltpu.PrefetchScalarGridSpec(
            num_scalar_prefetch=0,
            grid=(B, H),
            in_specs=in_specs,
            out_specs=o_spec,
        ),
        compiler_params=pltpu.CompilerParams(
            dimension_semantics=("parallel", "parallel")),
    )(*operands)


def _sdpa_ref(query, key, value, mask=None):
    scale = float(query.shape[-1]) ** -0.5
    q = query.astype(jnp.float32)
    k = key.astype(jnp.float32)
    v = value.astype(jnp.float32)
    s = jnp.einsum("bhqd,bhkd->bhqk", q, k) * scale
    if mask is not None:
        if mask.dtype == jnp.bool_:
            mask = jnp.where(mask, 0.0, -jnp.inf)
        s = s + mask
    p = jax.nn.softmax(s, axis=-1)
    return jnp.einsum("bhqk,bhkd->bhqd", p, v).astype(query.dtype)


# ------------------------------ MLA forward ----------------------------------
def _init_linear(key, in_features, out_features):
    kw, kb = jax.random.split(key)
    w = jax.random.normal(kw, (out_features, in_features), jnp.float32) * (in_features ** -0.5)
    b = 0.01 * jax.random.normal(kb, (out_features,), jnp.float32)
    return {"w": w, "b": b}


def _linear(p, x):
    # PyTorch nn.Linear: y = x @ W.T + b with W of shape (out, in).
    return jnp.einsum("...i,oi->...o", x, p["w"]) + p["b"]


def init_mla_params(key, args: ModelArgs):
    k = jax.random.split(key, 7)
    H, qn, qr = args.n_heads, args.q_nope_head_dim, args.q_rope_head_dim
    nkv, kn, kr, vd = (args.n_kv_heads, args.k_nope_head_dim,
                       args.k_rope_head_dim, args.v_head_dim)
    return {
        "w_dq": _init_linear(k[0], args.dim, args.q_compressed_dim),
        "q_norm": 1.0 + 0.1 * jax.random.normal(k[1], (args.q_compressed_dim,), jnp.float32),
        "w_uq_qr": _init_linear(k[2], args.q_compressed_dim, H * (qn + qr)),
        "w_dkv_kr": _init_linear(k[3], args.dim, args.kv_compressed_dim + kr),
        "kv_norm": 1.0 + 0.1 * jax.random.normal(k[4], (args.kv_compressed_dim,), jnp.float32),
        "w_uk_uv": _init_linear(k[5], args.kv_compressed_dim, nkv * (kn + vd)),
        "w_o": _init_linear(k[6], H * vd, args.dim),
        "rope_q": make_rope_cache(qr, args.max_position_embeddings, args.rope_theta),
        "rope_k": make_rope_cache(kr, args.max_position_embeddings, args.rope_theta),
    }


def mla_forward(params, args: ModelArgs, x, position_ids,
                attention_mask=None, kv_cache=None, *, use_pallas=True):
    """Forward pass of MultiLatentAttentionOptimized.  x: (B, S, dim)."""
    if kv_cache is not None:
        # TODO(synk): KV-cache (add_and_retrieve) path not implemented.
        raise NotImplementedError("kv_cache is not supported")

    rope_fn = rope_apply if use_pallas else _rope_ref
    norm_fn = rmsnorm if use_pallas else _rmsnorm_ref
    sdpa_fn = sdpa if use_pallas else _sdpa_ref

    B, S, _ = x.shape
    H, nkv = args.n_heads, args.n_kv_heads
    qn, qr = args.q_nope_head_dim, args.q_rope_head_dim
    kn, kr, vd = args.k_nope_head_dim, args.k_rope_head_dim, args.v_head_dim

    # ---------------- query path ----------------
    compressed_q = norm_fn(_linear(params["w_dq"], x), params["q_norm"], args.norm_eps)
    q = _linear(params["w_uq_qr"], compressed_q)                      # (B,S,H*(qn+qr))
    q_nope, q_rope = jnp.split(q, [H * qn], axis=-1)
    q_nope = q_nope.reshape(B, S, H, qn).transpose(0, 2, 1, 3)        # (B,H,S,qn)
    q_rope = q_rope.reshape(B, S, H, qr).transpose(0, 2, 1, 3)        # (B,H,S,qr)
    q_rope = rope_fn(q_rope, position_ids, *params["rope_q"])
    query = jnp.concatenate([q_nope, q_rope], axis=-1)                # (B,H,S,qn+qr)

    # ---------------- key / value path ----------------
    ckv_kr = _linear(params["w_dkv_kr"], x)                           # (B,S,kvc+kr)
    ckv, k_rope = jnp.split(ckv_kr, [args.kv_compressed_dim], axis=-1)
    ckv = norm_fn(ckv, params["kv_norm"], args.norm_eps)
    k_rope = k_rope.reshape(B, S, 1, kr).transpose(0, 2, 1, 3)        # (B,1,S,kr)
    k_rope = rope_fn(k_rope, position_ids, *params["rope_k"])

    kv = _linear(params["w_uk_uv"], ckv)                              # (B,S,nkv*(kn+vd))
    k_nope, v = jnp.split(kv, [nkv * kn], axis=-1)
    k_nope = k_nope.reshape(B, S, nkv, kn).transpose(0, 2, 1, 3)      # (B,nkv,S,kn)
    v = v.reshape(B, S, nkv, vd).transpose(0, 2, 1, 3)                # (B,nkv,S,vd)

    k_rope = jnp.repeat(k_rope, nkv, axis=1)                          # repeat_kv_heads
    key = jnp.concatenate([k_nope, k_rope], axis=-1)                  # (B,nkv,S,kn+kr)
    key = jnp.repeat(key, args.gqa_factor, axis=1)                    # (B,H,S,kn+kr)
    v = jnp.repeat(v, args.gqa_factor, axis=1)                        # (B,H,S,vd)

    attn = sdpa_fn(query, key, v, attention_mask)                     # (B,H,S,vd)
    attn = attn.transpose(0, 2, 1, 3).reshape(B, S, H * vd)
    return _linear(params["w_o"], attn)


# --------------------------------- demo ---------------------------------------
if __name__ == "__main__":
    args = ModelArgs(n_kv_heads=4)   # gqa_factor=2 exercises repeat_kv_heads
    B, S = 2, 8

    key = jax.random.PRNGKey(0)
    kp, kx, kpos = jax.random.split(key, 3)
    params = init_mla_params(kp, args)
    x = jax.random.normal(kx, (B, S, args.dim), dtype=jnp.float32)
    position_ids = jax.random.randint(
        kpos, (B, S), 0, args.max_position_embeddings, dtype=jnp.int32)

    _roll_even_sel()  # probe the rotation convention once, eagerly

    fwd = jax.jit(lambda p, xx, pid: mla_forward(p, args, xx, pid, use_pallas=True))
    out = jax.block_until_ready(fwd(params, x, position_ids))

    ref = jax.block_until_ready(
        mla_forward(params, args, x, position_ids, use_pallas=False))

    assert out.shape == (B, S, args.dim) and out.dtype == x.dtype
    assert jnp.allclose(out, ref, atol=1e-2, rtol=1e-2), \
        float(jnp.max(jnp.abs(out - ref)))
    print("KERNEL_OK")
</pallas_src>

<mosaic_0001>
module attributes {stable_mosaic.version = 11 : i64} {
  func.func @probe(%arg0: memref<2x128xi32, #tpu.memory_space<vmem>>, %arg1: memref<2x128xi32, #tpu.memory_space<vmem>>) attributes {dimension_semantics = [], scalar_prefetch = 0 : i64, scratch_operands = 0 : i64, tpu.core_type = #tpu.core_type<tc>} {
    %c0 = arith.constant 0 : index
    %c0_0 = arith.constant 0 : index
    %0 = vector.load %arg0[%c0, %c0_0] : memref<2x128xi32, #tpu.memory_space<vmem>>, vector<2x128xi32>
    %c1_i32 = arith.constant 1 : i32
    %1 = tpu.dynamic_rotate %0 by %c1_i32 dim 1 : vector<2x128xi32>, i32 -> vector<2x128xi32>
    %c0_1 = arith.constant 0 : index
    %c0_2 = arith.constant 0 : index
    %2 = vector.load %arg1[%c0_1, %c0_2] : memref<2x128xi32, #tpu.memory_space<vmem>>, vector<2x128xi32>
    tpu.vector_store %arg1[%c0_1, %c0_2], %1 {strides = array<i32>} : memref<2x128xi32, #tpu.memory_space<vmem>>, vector<2x128xi32>,
    return
  }
}

</mosaic_0001>

<bundles_post_ra>
// kernel: tpu_custom_call.1
= control target key start
LH: loop header
LB: loop body
LE: loop exit
PB: predicated region body
PF: predicated region fallthrough
CT: control target
= control target key end

     0   :  { %6 = vsyncpa [#allocation3], 0  ;;  %s106_s0 = inlined_call_operand.hbm [shape: s32[2,128], index: 0, kind: input, shape index: {}]   ;;  %s107_s1 = inlined_call_operand.hbm [shape: s32[2,128], index: 1, kind: output, shape index: {}]  }
   0x1   :  { %7 = vsyncpa [#allocation4], 0  ;;  %s87_s6 = smov [#allocation2]  }
   0x2   :  { %s14_s7 = sshll.u32 %s87_s6, 4  ;;  %s15_s7 = int_to_ptr.vmem [resolvable:$true] %s14_s7 }
   0x3   :  { %s51_s8 = scalar_lea.vmem %s15_s7, 32  ;;  %p56_p1 = scmp.lt.s32.totalorder %s15_s7, %s15_s7 }
   0x4   :  { %p52_p0 = scmp.ne.s32.totalorder %s15_s7, %s51_s8  ;;  %p57_p2 = scmp.lt.s32.totalorder %s51_s8, %s51_s8 }
   0x6   :  { %p58_p3 = por %p57_p2, %p56_p1 }
   0x8   :  { %p59_p4 = pnand %p58_p3, %p52_p0 }
   0xa   :  { %62 = shalt.err (!%p59_p4)
}
   0xb   :  { %17 = dma.hbm_to_vmem [thread:$0]  %s106_s0, 32, %s15_s7, [#allocation3]  }
   0xc   :  { %83 = dma.done.wait [#allocation3], 32  }
   0xd   :  { %84 = vsyncadd [#allocation3], 4294967264  ;;  %v21_v0 = vld [vmem:[#allocation2] sm:$0x3]  ;;  %s88_s11 = smov 1   ;;  %s89_s12 = smov [#allocation5]  }
   0xe   :  { %22 = vrot.lane.b32.xlu0 %v21_v0, %s88_s11  ;;  %s31_s13 = sshll.u32 %s89_s12, 4  ;;  %s32_s13 = int_to_ptr.vmem [resolvable:$true] %s31_s13 }
   0xf   :  { %s63_s14 = scalar_lea.vmem %s32_s13, 32  ;;  %p68_p6 = scmp.lt.s32.totalorder %s32_s13, %s32_s13 }
  0x10   :  { %p64_p5 = scmp.ne.s32.totalorder %s32_s13, %s63_s14  ;;  %p69_p7 = scmp.lt.s32.totalorder %s63_s14, %s63_s14 }
  0x12   :  { %p70_p8 = por %p69_p7, %p68_p6 }
  0x14   :  { %p71_p9 = pnand %p70_p8, %p64_p5 }
  0x80   :  { %v23_v1 = vpop.permute.xlu0 %22 }
  0x81   :  { %24 = vst [vmem:[#allocation5] sm:$0x3] %v23_v1 }
  0x82   :  { %74 = shalt.err (!%p71_p9)
}
  0x83   :  { %34 = dma.vmem_to_hbm [thread:$0]  %s32_s13, 32, %s107_s1, [#allocation4]  }
  0x84   :  { %85 = dma.done.wait [#allocation4], 32  }
  0x85   :  { %86 = vsyncadd [#allocation4], 4294967264 }
  0x86   :  { %38 = vsyncpa [#allocation3], 1 }
  0x87   :  { %39 = vsyncpa [#allocation4], 1 }

</bundles_post_ra>
